<compile_context>
chip_gen: v6e
topology: v6e:2x2x1
jax: 0.10.0
libtpu: 0.0.40
codegen_flags: <defaults>
</compile_context>

<pallas_src>
import functools

import jax
import jax.numpy as jnp
from jax import lax
from jax.experimental import pallas as pl
from jax.experimental.pallas import tpu as pltpu


# dot_general dimension numbers: contract x[B, K] with w[N, K] over K -> [B, N]
_CONTRACT_K = (((1,), (1,)), ((), ()))


def _single_block_kernel(x_ref, wmu_ref, wlv_ref, mu_ref, lv_ref):
    """Whole problem resident in VMEM: two direct matmuls, no grid, no scratch,
    no weight concatenation (weights stay in native [N, K] layout)."""
    x = x_ref[...]                                               # [B, K]
    mu_ref[...] = lax.dot_general(
        x, wmu_ref[...], _CONTRACT_K,
        preferred_element_type=jnp.float32).astype(mu_ref.dtype)
    lv_ref[...] = lax.dot_general(
        x, wlv_ref[...], _CONTRACT_K,
        preferred_element_type=jnp.float32).astype(lv_ref.dtype)


def _tiled_kernel(x_ref, wmu_ref, wlv_ref, mu_ref, lv_ref,
                  acc_mu, acc_lv, *, K, tk):
    """One grid step = one K-tile. Two small [B, N] f32 accumulators merged on
    the final step. The final (possibly partial) K-tile is masked in-kernel so
    the weight matrices are never padded/copied in HBM."""
    k = pl.program_id(0)

    @pl.when(k == 0)
    def _():
        acc_mu[...] = jnp.zeros_like(acc_mu)
        acc_lv[...] = jnp.zeros_like(acc_lv)

    x = x_ref[...]                                               # [B, tk]
    wmu = wmu_ref[...]                                           # [N, tk]
    wlv = wlv_ref[...]                                           # [N, tk]

    if K % tk != 0:  # static: masking cost only paid when a partial tile exists
        base = k * tk
        x_col = lax.broadcasted_iota(jnp.int32, x.shape, 1)
        w_col = lax.broadcasted_iota(jnp.int32, wmu.shape, 1)
        x = jnp.where(base + x_col < K, x, 0.0)
        wmu = jnp.where(base + w_col < K, wmu, 0.0)
        wlv = jnp.where(base + w_col < K, wlv, 0.0)

    acc_mu[...] += lax.dot_general(x, wmu, _CONTRACT_K,
                                   preferred_element_type=jnp.float32)
    acc_lv[...] += lax.dot_general(x, wlv, _CONTRACT_K,
                                   preferred_element_type=jnp.float32)

    @pl.when(k == pl.num_programs(0) - 1)
    def _():
        mu_ref[...] = acc_mu[...].astype(mu_ref.dtype)
        lv_ref[...] = acc_lv[...].astype(lv_ref.dtype)


def _round_up(x, m):
    return (x + m - 1) // m * m


def _physical_vmem_bytes():
    try:
        return int(pltpu.get_tpu_info().vmem_capacity_bytes)
    except Exception:
        return 64 << 20  # conservative fallback: smallest per-TC VMEM (v7x)


@functools.partial(jax.jit, static_argnames=("tk", "force_tiled"))
def linear_feature_compressor(feats, w_mu, w_logvar, *, tk=None, force_tiled=False):
    """feats: [B, ...] (e.g. NCHW). w_mu / w_logvar: [N, K] (PyTorch nn.Linear
    weight layout, K = prod(feats.shape[1:])). Returns (mu, logvar): [B, N]."""
    B = feats.shape[0]
    x = feats.reshape(B, -1)                  # == feats.view(B, -1)
    K = x.shape[1]
    N = w_mu.shape[0]
    assert w_mu.shape == (N, K) and w_logvar.shape == (N, K)

    # Per-array itemsizes (mixed-dtype safe VMEM estimates).
    x_item = jnp.dtype(x.dtype).itemsize
    wmu_item = jnp.dtype(w_mu.dtype).itemsize
    wlv_item = jnp.dtype(w_logvar.dtype).itemsize
    out_item = jnp.dtype(x.dtype).itemsize

    # Generation-aware budgets: v5e/v6e have 128 MiB physical VMEM, v7x 64 MiB.
    phys_vmem = _physical_vmem_bytes()
    big_vmem = phys_vmem >= (100 << 20)
    sb_budget = (24 << 20) if big_vmem else (20 << 20)   # single-block cutoff
    tiled_budget = sb_budget                             # double-buffered budget
    vmem_limit = min(phys_vmem * 3 // 4, 96 << 20)       # explicit scoped limit

    # True single-copy VMEM footprint of the single-block path:
    # inputs + both outputs + f32 dot temporaries.
    resident_bytes = (B * K * x_item
                      + N * K * (wmu_item + wlv_item)
                      + 2 * B * N * (out_item + 4))

    out_shapes = (jax.ShapeDtypeStruct((B, N), x.dtype),
                  jax.ShapeDtypeStruct((B, N), x.dtype))

    if (not force_tiled) and resident_bytes <= sb_budget:
        # Single block: one large contiguous DMA per array, no per-step overhead.
        mu, logvar = pl.pallas_call(
            _single_block_kernel,
            out_shape=out_shapes,
            compiler_params=pltpu.CompilerParams(vmem_limit_bytes=vmem_limit),
        )(x, w_mu, w_logvar)
    else:
        # Tile only the contraction (K) axis. tk sized against the
        # double-buffered VMEM budget; floor 2048 keeps per-row weight DMA
        # bursts >= 8 KB. Small user-passed tk (e.g. 256/384) is testing only.
        if tk is None:
            acc_out_bytes = 2 * B * N * 4 + 2 * 2 * B * N * out_item
            per_col = 2 * (B * x_item + N * (wmu_item + wlv_item))
            tk = (tiled_budget - acc_out_bytes) // max(per_col, 1)
            tk = max(2048, tk // 128 * 128)
        tk = _round_up(int(tk), 128)                  # satisfy (8, 128) lane tiling
        tk = min(tk, _round_up(K, 128))               # never larger than K (rounded)

        grid_k = pl.cdiv(K, tk)                       # last tile masked in-kernel

        kernel = functools.partial(_tiled_kernel, K=K, tk=tk)
        mu, logvar = pl.pallas_call(
            kernel,
            out_shape=out_shapes,
            grid_spec=pltpu.PrefetchScalarGridSpec(
                num_scalar_prefetch=0,
                grid=(grid_k,),
                in_specs=[
                    pl.BlockSpec((B, tk), lambda k: (0, k)),   # x      K-tile
                    pl.BlockSpec((N, tk), lambda k: (0, k)),   # W_mu   K-tile ([N, K] native)
                    pl.BlockSpec((N, tk), lambda k: (0, k)),   # W_lv   K-tile ([N, K] native)
                ],
                out_specs=[
                    pl.BlockSpec((B, N), lambda k: (0, 0)),    # mu     (resident)
                    pl.BlockSpec((B, N), lambda k: (0, 0)),    # logvar (resident)
                ],
                scratch_shapes=[pltpu.VMEM((B, N), jnp.float32),
                                pltpu.VMEM((B, N), jnp.float32)],
            ),
            compiler_params=pltpu.CompilerParams(
                dimension_semantics=("arbitrary",),
                vmem_limit_bytes=vmem_limit),
        )(x, w_mu, w_logvar)

    return mu, logvar


if __name__ == "__main__":
    # Small shapes consistent with the module: feats [B, C, H, W] flattened to
    # in_channels = C*H*W; content latent size = 32; style size unused.
    B, C, H, W = 2, 4, 16, 16
    in_channels = C * H * W            # 1024
    out_channels_content = 32
    out_channels_style = 8             # unused by forward (matches module)

    key = jax.random.PRNGKey(0)
    k_x, k_mu, k_lv = jax.random.split(key, 3)

    feats = jax.random.normal(k_x, (B, C, H, W), dtype=jnp.float32)

    # Deterministic nn.Linear-style init: U(-1/sqrt(in), 1/sqrt(in)),
    # weight layout [out, in], no bias.
    bound = 1.0 / (in_channels ** 0.5)
    w_mu = jax.random.uniform(k_mu, (out_channels_content, in_channels),
                              minval=-bound, maxval=bound, dtype=jnp.float32)
    w_logvar = jax.random.uniform(k_lv, (out_channels_content, in_channels),
                                  minval=-bound, maxval=bound, dtype=jnp.float32)

    # Fast path: single-block kernel (the demo's weights easily fit VMEM).
    mu, logvar = linear_feature_compressor(feats, w_mu, w_logvar)
    jax.block_until_ready((mu, logvar))

    # Tiled path, K divisible by tk (no masking), validates accumulation.
    mu_t, logvar_t = linear_feature_compressor(feats, w_mu, w_logvar,
                                               tk=256, force_tiled=True)
    jax.block_until_ready((mu_t, logvar_t))

    # Tiled path, K NOT divisible by tk (1024 % 384 != 0): exercises the
    # in-kernel masking of the partial final K-tile (no jnp.pad of weights).
    mu_m, logvar_m = linear_feature_compressor(feats, w_mu, w_logvar,
                                               tk=384, force_tiled=True)
    jax.block_until_ready((mu_m, logvar_m))

    # Cross-check against plain JAX reference.
    x_flat = feats.reshape(B, -1)
    mu_ref = x_flat @ w_mu.T
    lv_ref = x_flat @ w_logvar.T
    assert mu.shape == (B, out_channels_content)
    assert logvar.shape == (B, out_channels_content)
    assert jnp.allclose(mu, mu_ref, atol=1e-5, rtol=1e-5)
    assert jnp.allclose(logvar, lv_ref, atol=1e-5, rtol=1e-5)
    assert jnp.allclose(mu_t, mu_ref, atol=1e-5, rtol=1e-5)
    assert jnp.allclose(logvar_t, lv_ref, atol=1e-5, rtol=1e-5)
    assert jnp.allclose(mu_m, mu_ref, atol=1e-5, rtol=1e-5)
    assert jnp.allclose(logvar_m, lv_ref, atol=1e-5, rtol=1e-5)

    print("KERNEL_OK")
</pallas_src>

<mosaic_0001>
module attributes {stable_mosaic.version = 11 : i64} {
  func.func @_single_block_kernel(%arg0: memref<2x1024xf32, #tpu.memory_space<vmem>>, %arg1: memref<32x1024xf32, #tpu.memory_space<vmem>>, %arg2: memref<32x1024xf32, #tpu.memory_space<vmem>>, %arg3: memref<2x32xf32, #tpu.memory_space<vmem>>, %arg4: memref<2x32xf32, #tpu.memory_space<vmem>>) attributes {dimension_semantics = [], scalar_prefetch = 0 : i64, scratch_operands = 0 : i64, tpu.core_type = #tpu.core_type<tc>} {
    %c0 = arith.constant 0 : index
    %c0_0 = arith.constant 0 : index
    %0 = vector.load %arg0[%c0, %c0_0] : memref<2x1024xf32, #tpu.memory_space<vmem>>, vector<2x1024xf32>
    %c0_1 = arith.constant 0 : index
    %c0_2 = arith.constant 0 : index
    %1 = vector.load %arg1[%c0_1, %c0_2] : memref<32x1024xf32, #tpu.memory_space<vmem>>, vector<32x1024xf32>
    %cst = arith.constant dense<0.000000e+00> : vector<2x32xf32>
    %2 = tpu.matmul %0, %1, %cst {dimension_numbers = #tpu.dot_dimension_numbers<[1], [1], [0], [0], [0, 0, 1, 0], [], []>} : vector<2x1024xf32>, vector<32x1024xf32>, vector<2x32xf32> -> vector<2x32xf32>
    %c0_3 = arith.constant 0 : index
    %c0_4 = arith.constant 0 : index
    %3 = vector.load %arg3[%c0_3, %c0_4] : memref<2x32xf32, #tpu.memory_space<vmem>>, vector<2x32xf32>
    tpu.vector_store %arg3[%c0_3, %c0_4], %2 {strides = array<i32>} : memref<2x32xf32, #tpu.memory_space<vmem>>, vector<2x32xf32>,
    %c0_5 = arith.constant 0 : index
    %c0_6 = arith.constant 0 : index
    %4 = vector.load %arg2[%c0_5, %c0_6] : memref<32x1024xf32, #tpu.memory_space<vmem>>, vector<32x1024xf32>
    %cst_7 = arith.constant dense<0.000000e+00> : vector<2x32xf32>
    %5 = tpu.matmul %0, %4, %cst_7 {dimension_numbers = #tpu.dot_dimension_numbers<[1], [1], [0], [0], [0, 0, 1, 0], [], []>} : vector<2x1024xf32>, vector<32x1024xf32>, vector<2x32xf32> -> vector<2x32xf32>
    %c0_8 = arith.constant 0 : index
    %c0_9 = arith.constant 0 : index
    %6 = vector.load %arg4[%c0_8, %c0_9] : memref<2x32xf32, #tpu.memory_space<vmem>>, vector<2x32xf32>
    tpu.vector_store %arg4[%c0_8, %c0_9], %5 {strides = array<i32>} : memref<2x32xf32, #tpu.memory_space<vmem>>, vector<2x32xf32>,
    return
  }
}

</mosaic_0001>

<bundles_post_ra>
// kernel: linear_feature_compressor.1
= control target key start
LH: loop header
LB: loop body
LE: loop exit
PB: predicated region body
PF: predicated region fallthrough
CT: control target
= control target key end

     0   :  { %10 = vsyncpa [#allocation3], 0  ;;  %s938_s0 = inlined_call_operand.vmem [shape: f32[2,1024], index: 0, kind: input, shape index: {}]   ;;  %s939_s1 = inlined_call_operand.hbm [shape: f32[32,1024], index: 1, kind: input, shape index: {}]   ;;  %s940_s2 = inlined_call_operand.hbm [shape: f32[32,1024], index: 2, kind: input, shape index: {}]   ;;  %s941_s3 = inlined_call_operand.hbm [shape: f32[2,32], index: 3, kind: output, shape index: {0}]   ;;  %s942_s4 = inlined_call_operand.hbm [shape: f32[2,32], index: 4, kind: output, shape index: {1}]  }
   0x1   :  { %11 = vsyncpa [#allocation6], 0 }
   0x2   :  { %12 = vsyncpa [#allocation4], 0 }
   0x3   :  { %13 = vsyncpa [#allocation9], 0  ;;  %s846_s15 = smov [#allocation2]  }
   0x4   :  { %s21_s16 = sshll.u32 %s846_s15, 4  ;;  %s22_s16 = int_to_ptr.vmem [resolvable:$true] %s21_s16 }
   0x5   :  { %s766_s17 = scalar_lea.vmem %s22_s16, 4096  ;;  %p771_p1 = scmp.lt.s32.totalorder %s22_s16, %s22_s16 }
   0x6   :  { %p767_p0 = scmp.ne.s32.totalorder %s22_s16, %s766_s17  ;;  %p772_p2 = scmp.lt.s32.totalorder %s766_s17, %s766_s17 }
   0x8   :  { %p773_p3 = por %p772_p2, %p771_p1 }
   0xa   :  { %p774_p4 = pnand %p773_p3, %p767_p0 }
   0xc   :  { %777 = shalt.err (!%p774_p4)
}
   0xd   :  { %s847_s18 = smov 1024   ;;  %s848_s19 = smov 64  }
   0xe   :  { %27 = dma.hbm_to_vmem [thread:$0]  %s939_s1, 4096, %s22_s16, [#allocation3], %s847_s18, %s847_s18, %s848_s19  }
   0xf   :  { %s849_s22 = smov [#allocation5]  }
  0x10   :  { %s33_s23 = sshll.u32 %s849_s22, 4  ;;  %s34_s23 = int_to_ptr.vmem [resolvable:$true] %s33_s23 }
  0x11   :  { %s786_s24 = scalar_lea.vmem %s34_s23, 4096  ;;  %p791_p6 = scmp.lt.s32.totalorder %s34_s23, %s34_s23 }
  0x12   :  { %p787_p5 = scmp.ne.s32.totalorder %s34_s23, %s786_s24  ;;  %p792_p7 = scmp.lt.s32.totalorder %s786_s24, %s786_s24 }
  0x14   :  { %p793_p8 = por %p792_p7, %p791_p6 }
  0x16   :  { %p794_p9 = pnand %p793_p8, %p787_p5 }
  0x18   :  { %797 = shalt.err (!%p794_p9)
}
  0x19   :  { %39 = dma.hbm_to_vmem [thread:$0]  %s940_s2, 4096, %s34_s23, [#allocation6], %s847_s18, %s847_s18, %s848_s19  }
  0x1a   :  { %838 = dma.done.wait [#allocation3], 4096  }
  0x1b   :  { %839 = vsyncadd [#allocation3], 4294963200 }
  0x1c   :  { %840 = dma.done.wait [#allocation6], 4096  }
  0x1d   :  { %841 = vsyncadd [#allocation6], 4294963200  ;;  %v850_v0 = vmov 1983009808   ;;  %v86_v2 = vlaneseq  ;;  %v73_v5 = vld [vmem:[#allocation2 + $0xc8] sm:$0xff]  ;;  %v75_v6 = vld [vmem:[#allocation2 + $0xd8] sm:$0xff] }
  0x1e   :  { %v84_v1 = vunpack.c.l.s4 %v850_v0  ;;  %v72_v7 = vld [vmem:[#allocation2 + $0xc0] sm:$0xff]  ;;  %148 = vmatprep.subr.mxu0 %v73_v5  ;;  %218 = vmatprep.subr.mxu1 %v75_v6  ;;  %v74_v8 = vld [vmem:[#allocation2 + $0xd0] sm:$0xff]  ;;  %v65_v9 = vld [vmem:[#allocation2 + $0x88] sm:$0xff]  ;;  %vm404_vm0 = vcmask 254976  }
  0x1f   :  { %v87_v4 = vshrl.u32 %v86_v2, 7  ;;  %v67_v10 = vld [vmem:[#allocation2 + $0x98] sm:$0xff]  ;;  %149 = vmatpush1.xpose.msra.mxu0 %v72_v7  ;;  %219 = vmatpush1.xpose.msra.mxu1 %v74_v8  ;;  %v64_v12 = vld [vmem:[#allocation2 + $0x80] sm:$0xff]  ;;  %v66_v13 = vld [vmem:[#allocation2 + $0x90] sm:$0xff] }
  0x20   :  { %v85_v3 = vunpack.c.0.s8 %v84_v1  ;;  %150 = vmatprep.subr.mxu0 %v65_v9  ;;  %220 = vmatprep.subr.mxu1 %v67_v10  ;;  %v57_v14 = vld [vmem:[#allocation2 + $0x48] sm:$0xff]  ;;  %v59_v15 = vld [vmem:[#allocation2 + $0x58] sm:$0xff]  ;;  %v46_v16 = vld [vmem:[%s938_s0] sm:$0xff] }
  0x21   :  { %v82_v18 = vcombine.high %v46_v16, %v46_v16  ;;  %v56_v19 = vld [vmem:[#allocation2 + $0x40] sm:$0xff]  ;;  %v58_v20 = vld [vmem:[#allocation2 + $0x50] sm:$0xff]  ;;  %v49_v21 = vld [vmem:[#allocation2 + $0x8] sm:$0xff] }
  0x22   :  { %v88_v11 = vsub.s32 %v85_v3, %v87_v4  ;;  %v51_v22 = vld [vmem:[#allocation2 + $0x18] sm:$0xff]  ;;  %v48_v26 = vld [vmem:[#allocation2] sm:$0xff]  ;;  %v50_v27 = vld [vmem:[#allocation2 + $0x10] sm:$0xff] }
  0x23   :  { %151 = vmatpush1.xpose.msra.mxu0 %v64_v12  ;;  %221 = vmatpush1.xpose.msra.mxu1 %v66_v13  ;;  %v47_v28 = vld [vmem:[%s938_s0 + $0x8] sm:$0xff]  ;;  %v79_v30 = vld [vmem:[#allocation2 + $0xf8] sm:$0xff]  ;;  %v76_v34 = vld [vmem:[#allocation2 + $0xe0] sm:$0xff]  ;;  %s851_s0 = smov [#allocation7]  }
  0x24   :  { %v887_v17 = vrot.slane %v46_v16, %v88_v11  ;;  %152 = vmatprep.subr.mxu0 %v57_v14  ;;  %222 = vmatprep.subr.mxu1 %v59_v15  ;;  %v893_v24 = vrot.slane %v82_v18, %v88_v11  ;;  %v77_v29 = vld [vmem:[#allocation2 + $0xe8] sm:$0xff]  ;;  %v904_v31 = vrot.slane %v47_v28, %v88_v11  ;;  %v78_v35 = vld [vmem:[#allocation2 + $0xf0] sm:$0xff]  ;;  %v71_v37 = vld [vmem:[#allocation2 + $0xb8] sm:$0xff]  ;;  %s725_s29 = sshll.u32 %s851_s0, 4  ;;  %s726_s29 = int_to_ptr.vmem [resolvable:$true] %s725_s29 }
  0x25   :  { %v99_v32 = vcombine.high %v47_v28, %v47_v28  ;;  %v69_v36 = vld [vmem:[#allocation2 + $0xa8] sm:$0xff]  ;;  %v68_v40 = vld [vmem:[#allocation2 + $0xa0] sm:$0xff]  ;;  %v70_v41 = vld [vmem:[#allocation2 + $0xb0] sm:$0xff]  ;;  %s798_s30 = scalar_lea.vmem %s726_s29, 32  ;;  %p803_p11 = scmp.lt.s32.totalorder %s726_s29, %s726_s29 }
  0x26   :  { %v891_v23 = vcombine.high %v887_v17, %v887_v17  ;;  %v897_v25 = vcombine.high %v893_v24, %v893_v24  ;;  %v910_v38 = vcombine.high %v904_v31, %v904_v31  ;;  %v61_v42 = vld [vmem:[#allocation2 + $0x68] sm:$0xff]  ;;  %v63_v43 = vld [vmem:[#allocation2 + $0x78] sm:$0xff]  ;;  %v60_v44 = vld [vmem:[#allocation2 + $0x60] sm:$0xff]  ;;  %p799_p10 = scmp.ne.s32.totalorder %s726_s29, %s798_s30  ;;  %p804_p12 = scmp.lt.s32.totalorder %s798_s30, %s798_s30 }
  0x27   :  { %153 = vmatpush1.xpose.msra.mxu0 %v56_v19  ;;  %223 = vmatpush1.xpose.msra.mxu1 %v58_v20  ;;  %v906_v33 = vrot.slane %v99_v32, %v88_v11  ;;  %v62_v45 = vld [vmem:[#allocation2 + $0x70] sm:$0xff]  ;;  %v53_v46 = vld [vmem:[#allocation2 + $0x28] sm:$0xff]  ;;  %v55_v47 = vld [vmem:[#allocation2 + $0x38] sm:$0xff] }
  0x28   :  { %154 = vmatprep.subr.mxu0 %v49_v21  ;;  %224 = vmatprep.subr.mxu1 %v51_v22  ;;  %v52_v48 = vld [vmem:[#allocation2 + $0x20] sm:$0xff]  ;;  %v54_v49 = vld [vmem:[#allocation2 + $0x30] sm:$0xff]  ;;  %v431_v50 = vld [vmem:[#allocation5 + $0xc8] sm:$0xff]  ;;  %p805_p13 = por %p804_p12, %p803_p11 }
  0x29   :  { %188 = vmatprep.mubr.f32.mxu0 %v891_v23  ;;  %258 = vmatprep.mubr.f32.mxu1 %v897_v25  ;;  %v914_v39 = vcombine.high %v906_v33, %v906_v33  ;;  %v433_v51 = vld [vmem:[#allocation5 + $0xd8] sm:$0xff]  ;;  %v430_v52 = vld [vmem:[#allocation5 + $0xc0] sm:$0xff]  ;;  %v432_v53 = vld [vmem:[#allocation5 + $0xd0] sm:$0xff] }
  0x2a   :  { %v423_v54 = vld [vmem:[#allocation5 + $0x88] sm:$0xff]  ;;  %v425_v55 = vld [vmem:[#allocation5 + $0x98] sm:$0xff]  ;;  %v422_v56 = vld [vmem:[#allocation5 + $0x80] sm:$0xff]  ;;  %p806_p0 = pnand %p805_p13, %p799_p10 }
  0x2b   :  { %155 = vmatpush1.xpose.msra.mxu0 %v48_v26  ;;  %225 = vmatpush1.xpose.msra.mxu1 %v50_v27  ;;  %v424_v57 = vld [vmem:[#allocation5 + $0x90] sm:$0xff]  ;;  %v415_v58 = vld [vmem:[#allocation5 + $0x48] sm:$0xff]  ;;  %v417_v59 = vld [vmem:[#allocation5 + $0x58] sm:$0xff] }
  0x2c   :  { %288 = vmatprep.subr.mxu0 %v77_v29  ;;  %358 = vmatprep.subr.mxu1 %v79_v30  ;;  %v414_v60 = vld [vmem:[#allocation5 + $0x40] sm:$0xff]  ;;  %v416_v61 = vld [vmem:[#allocation5 + $0x50] sm:$0xff]  ;;  %v407_v62 = vld [vmem:[#allocation5 + $0x8] sm:$0xff] }
  0x2d   :  { %v409_v63 = vld [vmem:[#allocation5 + $0x18] sm:$0xff]  ;;  %v406_v0 = vld [vmem:[#allocation5] sm:$0xff]  ;;  %v408_v1 = vld [vmem:[#allocation5 + $0x10] sm:$0xff] }
  0x2e   :  { %189 = vmatmul.mubr.f32.vlgmr.msra.gmra.mxu0 %v887_v17  ;;  %259 = vmatmul.mubr.f32.vlgmr.msra.gmra.mxu1 %v893_v24  ;;  %v435_v2 = vld [vmem:[#allocation5 + $0xe8] sm:$0xff]  ;;  %v437_v3 = vld [vmem:[#allocation5 + $0xf8] sm:$0xff]  ;;  %v434_v4 = vld [vmem:[#allocation5 + $0xe0] sm:$0xff] }
  0x2f   :  { %289 = vmatpush1.xpose.msra.mxu0 %v76_v34  ;;  %359 = vmatpush1.xpose.msra.mxu1 %v78_v35  ;;  %v436_v5 = vld [vmem:[#allocation5 + $0xf0] sm:$0xff]  ;;  %v427_v6 = vld [vmem:[#allocation5 + $0xa8] sm:$0xff]  ;;  %v429_v7 = vld [vmem:[#allocation5 + $0xb8] sm:$0xff] }
  0x30   :  { %290 = vmatprep.subr.mxu0 %v69_v36  ;;  %360 = vmatprep.subr.mxu1 %v71_v37  ;;  %v426_v8 = vld [vmem:[#allocation5 + $0xa0] sm:$0xff]  ;;  %v428_v9 = vld [vmem:[#allocation5 + $0xb0] sm:$0xff]  ;;  %v419_v10 = vld [vmem:[#allocation5 + $0x68] sm:$0xff] }
  0x31   :  { %328 = vmatprep.mubr.f32.mxu0 %v910_v38  ;;  %398 = vmatprep.mubr.f32.mxu1 %v914_v39  ;;  %v421_v11 = vld [vmem:[#allocation5 + $0x78] sm:$0xff]  ;;  %v418_v12 = vld [vmem:[#allocation5 + $0x60] sm:$0xff]  ;;  %v420_v13 = vld [vmem:[#allocation5 + $0x70] sm:$0xff] }
  0x32   :  { %v411_v14 = vld [vmem:[#allocation5 + $0x28] sm:$0xff]  ;;  %v413_v15 = vld [vmem:[#allocation5 + $0x38] sm:$0xff]  ;;  %v410_v16 = vld [vmem:[#allocation5 + $0x20] sm:$0xff] }
  0x33   :  { %291 = vmatpush1.xpose.msra.mxu0 %v68_v40  ;;  %361 = vmatpush1.xpose.msra.mxu1 %v70_v41 }
  0x34   :  { %292 = vmatprep.subr.mxu0 %v61_v42  ;;  %362 = vmatprep.subr.mxu1 %v63_v43 }
  0x37   :  { %293 = vmatpush1.xpose.msra.mxu0 %v60_v44  ;;  %363 = vmatpush1.xpose.msra.mxu1 %v62_v45 }
  0x38   :  { %294 = vmatprep.subr.mxu0 %v53_v46  ;;  %364 = vmatprep.subr.mxu1 %v55_v47 }
  0x3b   :  { %295 = vmatpush1.xpose.msra.mxu0 %v52_v48  ;;  %365 = vmatpush1.xpose.msra.mxu1 %v54_v49 }
  0x3c   :  { %462 = vmatprep.subr.mxu0 %v431_v50  ;;  %532 = vmatprep.subr.mxu1 %v433_v51 }
  0x3e   :  { %329 = vmatmul.mubr.f32.vlgmr.msra.gmra.mxu0 %v904_v31  ;;  %399 = vmatmul.mubr.f32.vlgmr.msra.gmra.mxu1 %v906_v33 }
  0x3f   :  { %463 = vmatpush1.xpose.msra.mxu0 %v430_v52  ;;  %533 = vmatpush1.xpose.msra.mxu1 %v432_v53 }
  0x40   :  { %464 = vmatprep.subr.mxu0 %v423_v54  ;;  %534 = vmatprep.subr.mxu1 %v425_v55 }
  0x41   :  { %502 = vmatprep.mubr.f32.mxu0 %v891_v23  ;;  %572 = vmatprep.mubr.f32.mxu1 %v897_v25 }
  0x43   :  { %465 = vmatpush1.xpose.msra.mxu0 %v422_v56  ;;  %535 = vmatpush1.xpose.msra.mxu1 %v424_v57 }
  0x44   :  { %466 = vmatprep.subr.mxu0 %v415_v58  ;;  %536 = vmatprep.subr.mxu1 %v417_v59 }
  0x47   :  { %467 = vmatpush1.xpose.msra.mxu0 %v414_v60  ;;  %537 = vmatpush1.xpose.msra.mxu1 %v416_v61 }
  0x48   :  { %468 = vmatprep.subr.mxu0 %v407_v62  ;;  %538 = vmatprep.subr.mxu1 %v409_v63 }
  0x4b   :  { %469 = vmatpush1.xpose.msra.mxu0 %v406_v0  ;;  %539 = vmatpush1.xpose.msra.mxu1 %v408_v1 }
  0x4c   :  { %602 = vmatprep.subr.mxu0 %v435_v2  ;;  %672 = vmatprep.subr.mxu1 %v437_v3 }
  0x4e   :  { %503 = vmatmul.mubr.f32.vlgmr.msra.gmra.mxu0 %v887_v17  ;;  %573 = vmatmul.mubr.f32.vlgmr.msra.gmra.mxu1 %v893_v24  ;;  %v412_v17 = vld [vmem:[#allocation5 + $0x30] sm:$0xff] }
  0x4f   :  { %603 = vmatpush1.xpose.msra.mxu0 %v434_v4  ;;  %673 = vmatpush1.xpose.msra.mxu1 %v436_v5 }
  0x50   :  { %604 = vmatprep.subr.mxu0 %v427_v6  ;;  %674 = vmatprep.subr.mxu1 %v429_v7 }
  0x51   :  { %642 = vmatprep.mubr.f32.mxu0 %v910_v38  ;;  %712 = vmatprep.mubr.f32.mxu1 %v914_v39 }
  0x53   :  { %605 = vmatpush1.xpose.msra.mxu0 %v426_v8  ;;  %675 = vmatpush1.xpose.msra.mxu1 %v428_v9 }
  0x54   :  { %606 = vmatprep.subr.mxu0 %v419_v10  ;;  %676 = vmatprep.subr.mxu1 %v421_v11 }
  0x57   :  { %607 = vmatpush1.xpose.msra.mxu0 %v418_v12  ;;  %677 = vmatpush1.xpose.msra.mxu1 %v420_v13 }
  0x58   :  { %608 = vmatprep.subr.mxu0 %v411_v14  ;;  %678 = vmatprep.subr.mxu1 %v413_v15 }
  0x5b   :  { %609 = vmatpush1.xpose.msra.mxu0 %v410_v16  ;;  %679 = vmatpush1.xpose.msra.mxu1 %v412_v17 }
  0x5e   :  { %643 = vmatmul.mubr.f32.vlgmr.msra.gmra.mxu0 %v904_v31  ;;  %713 = vmatmul.mubr.f32.vlgmr.msra.gmra.mxu1 %v906_v33 }
  0xee   :  { %v190_v18 = vpop.f32.mrf.mxu0  ;;  %v260_v19 = vpop.f32.mrf.mxu1 }
  0xef   :  { %v261_v22 = vadd.f32 %v260_v19, %v190_v18 }
  0xf0   :  { %v192_v20 = vpop.f32.mrf.mxu0  ;;  %v262_v21 = vpop.f32.mrf.mxu1 }
  0xfe   :  { %v330_v23 = vpop.f32.mrf.mxu0  ;;  %v400_v24 = vpop.f32.mrf.mxu1 }
  0xff   :  { %v331_v25 = vadd.f32 %v330_v23, %v261_v22 }
 0x100   :  { %v332_v26 = vpop.f32.mrf.mxu0  ;;  %v402_v27 = vpop.f32.mrf.mxu1 }
 0x101   :  { %v401_v28 = vadd.f32 %v400_v24, %v331_v25 }
 0x103   :  { %405 = vst.msk [vmem:[#allocation7] sm:$0x3] %vm404_vm0, %v401_v28 }
 0x104   :  { %809 = shalt.err (!%p806_p0)
}
 0x105   :  { %728 = dma.vmem_to_hbm [thread:$0]  %s726_s29, 32, %s941_s3, [#allocation4]  }
 0x106   :  { %s852_s7 = smov [#allocation8]  }
 0x107   :  { %s735_s8 = sshll.u32 %s852_s7, 4  ;;  %s736_s8 = int_to_ptr.vmem [resolvable:$true] %s735_s8 }
 0x108   :  { %s818_s9 = scalar_lea.vmem %s736_s8, 32  ;;  %p823_p2 = scmp.lt.s32.totalorder %s736_s8, %s736_s8 }
 0x109   :  { %p819_p1 = scmp.ne.s32.totalorder %s736_s8, %s818_s9  ;;  %p824_p3 = scmp.lt.s32.totalorder %s818_s9, %s818_s9 }
 0x10b   :  { %p825_p4 = por %p824_p3, %p823_p2 }
 0x10d   :  { %p826_p5 = pnand %p825_p4, %p819_p1 }
 0x10e   :  { %v504_v29 = vpop.f32.mrf.mxu0  ;;  %v574_v30 = vpop.f32.mrf.mxu1 }
 0x10f   :  { %v575_v33 = vadd.f32 %v574_v30, %v504_v29 }
 0x110   :  { %v506_v31 = vpop.f32.mrf.mxu0  ;;  %v576_v32 = vpop.f32.mrf.mxu1 }
 0x11e   :  { %v644_v34 = vpop.f32.mrf.mxu0  ;;  %v714_v35 = vpop.f32.mrf.mxu1 }
 0x11f   :  { %v645_v36 = vadd.f32 %v644_v34, %v575_v33 }
 0x120   :  { %v646_v37 = vpop.f32.mrf.mxu0  ;;  %v716_v38 = vpop.f32.mrf.mxu1 }
 0x121   :  { %v715_v39 = vadd.f32 %v714_v35, %v645_v36 }
 0x123   :  { %718 = vst.msk [vmem:[#allocation8] sm:$0x3] %vm404_vm0, %v715_v39 }
 0x124   :  { %829 = shalt.err (!%p826_p5)
}
 0x125   :  { %738 = dma.vmem_to_hbm [thread:$0]  %s736_s8, 32, %s942_s4, [#allocation9]  }
 0x126   :  { %842 = dma.done.wait [#allocation4], 32  }
 0x127   :  { %843 = vsyncadd [#allocation4], 4294967264 }
 0x128   :  { %844 = dma.done.wait [#allocation9], 32  }
 0x129   :  { %845 = vsyncadd [#allocation9], 4294967264 }
 0x12a   :  { %745 = vsyncpa [#allocation3], 1 }
 0x12b   :  { %746 = vsyncpa [#allocation6], 1 }
 0x12c   :  { %747 = vsyncpa [#allocation4], 1 }
 0x12d   :  { %748 = vsyncpa [#allocation9], 1 }

</bundles_post_ra>
